<compile_context>
chip_gen: v7x
topology: tpu7x:2x2x1
jax: 0.10.0
libtpu: 0.0.40
codegen_flags: <defaults>
</compile_context>

<pallas_src>
import functools

import jax
import jax.numpy as jnp
from jax import lax
from jax.experimental import pallas as pl
from jax.experimental.pallas import tpu as pltpu


def _lstm_kernel(max_len_ref, lengths_ref, x_ref, w_ref, b_ref, w_lin_ref, b_lin_ref,
                 out_ref, h_sc, c_sc, *, hidden_size, time_chunk):
    H = hidden_size
    t_chunk = pl.program_id(1)
    chunk_start = t_chunk * time_chunk

    @pl.when(t_chunk == 0)
    def _init():
        h_sc[...] = jnp.zeros_like(h_sc)
        c_sc[...] = jnp.zeros_like(c_sc)

    # Skip whole chunks that start at/after the longest valid sequence in the batch.
    @pl.when(chunk_start < max_len_ref[0])
    def _chunk():
        lengths = lengths_ref[...]                  # (TB, 1) int32
        w = w_ref[...]                              # (I+H, 4H), compute dtype
        b = b_ref[...]                              # (1, 4H) f32
        cdt = w.dtype

        def step(s, carry):
            h, c = carry                            # (TB, H) f32
            t = chunk_start + s
            x_t = x_ref[s]                          # (TB, I), compute dtype
            # Fused gate matmul: [x_t || h] @ [W_ih^T ; W_hh^T]
            xh = jnp.concatenate([x_t, h.astype(cdt)], axis=-1)              # (TB, I+H)
            gates = jnp.dot(xh, w, preferred_element_type=jnp.float32) + b   # (TB, 4H) f32
            # PyTorch gate order [i, f, g, o].
            i_g = jax.nn.sigmoid(gates[:, 0 * H:1 * H])
            f_g = jax.nn.sigmoid(gates[:, 1 * H:2 * H])
            g_g = jnp.tanh(gates[:, 2 * H:3 * H])
            o_g = jax.nn.sigmoid(gates[:, 3 * H:4 * H])
            c_new = f_g * c + i_g * g_g
            h_new = o_g * jnp.tanh(c_new)
            # Freeze the state once t >= lengths[b]; the frozen h equals h at step
            # lengths[b]-1, which is exactly the pad_packed_sequence + gather semantics.
            valid = t < lengths                     # (TB, 1) bool, broadcasts over H
            return jnp.where(valid, h_new, h), jnp.where(valid, c_new, c)

        h, c = lax.fori_loop(0, time_chunk, step, (h_sc[...], c_sc[...]), unroll=True)
        h_sc[...] = h
        c_sc[...] = c

    @pl.when(t_chunk == pl.num_programs(1) - 1)
    def _epilogue():
        hr = jnp.maximum(h_sc[...], 0.0)            # ReLU
        # Linear(H, 1): VPU multiply + lane reduce instead of an N=1 MXU matmul.
        out_ref[...] = (jnp.sum(hr * w_lin_ref[...], axis=-1, keepdims=True)
                        + b_lin_ref[...])


def _pick_batch_tile(B):
    """Prefer >=2 sublane-aligned batch tiles so v7x megacore can split the batch."""
    for tb in (256, 128, 64, 32, 16, 8):
        if B % tb == 0 and B // tb >= 2:
            return tb
    return B


def minibatch_lstm_pallas(x, lengths, params, *, time_chunk=8,
                          compute_dtype=jnp.bfloat16):
    """x: (T, B, I) f32, lengths: (B,) int. Returns (B,) f32."""
    T, B, I = x.shape
    H = params["w_hh"].shape[1]

    # ---- host-side weight prep ----
    # Stacked gate weight so the per-step matmul is a single [x||h] @ W.
    w_stacked = jnp.concatenate(
        [params["w_ih"].T, params["w_hh"].T], axis=0).astype(compute_dtype)  # (I+H, 4H)
    b_all = (params["b_ih"] + params["b_hh"]).reshape(1, 4 * H).astype(jnp.float32)
    w_lin_row = params["w_lin"].reshape(1, H).astype(jnp.float32)
    b_lin = params["b_lin"].reshape(1, 1).astype(jnp.float32)

    # PyTorch pack_padded_sequence would reject lengths outside [1, T]; clamp defensively.
    lengths2d = jnp.clip(jnp.asarray(lengths, jnp.int32), 0, T).reshape(B, 1)
    max_len = jnp.max(lengths2d).reshape(1)          # scalar-prefetched

    # ---- time chunking ----
    tc = max(1, min(int(time_chunk), T))
    nt = pl.cdiv(T, tc)
    t_pad = nt * tc
    if t_pad != T:
        # Padded steps are frozen (t >= lengths <= T) / skipped, so zeros are fine.
        x = jnp.pad(x, ((0, t_pad - T), (0, 0), (0, 0)))
    x = x.astype(compute_dtype)

    # ---- batch tiling (parallel axis; useful on v7x's 2 TensorCores) ----
    tb = _pick_batch_tile(B)
    nb = B // tb

    kernel = functools.partial(_lstm_kernel, hidden_size=H, time_chunk=tc)

    out = pl.pallas_call(
        kernel,
        out_shape=jax.ShapeDtypeStruct((B, 1), jnp.float32),
        grid_spec=pltpu.PrefetchScalarGridSpec(
            num_scalar_prefetch=1,                   # max_len -> SMEM
            grid=(nb, nt),
            in_specs=[
                pl.BlockSpec((tb, 1), lambda b, t, ml: (b, 0)),          # lengths
                pl.BlockSpec((tc, tb, I), lambda b, t, ml: (t, b, 0)),   # x chunk
                pl.BlockSpec((I + H, 4 * H), lambda b, t, ml: (0, 0)),   # [W_ih^T ; W_hh^T]
                pl.BlockSpec((1, 4 * H), lambda b, t, ml: (0, 0)),       # b_ih + b_hh
                pl.BlockSpec((1, H), lambda b, t, ml: (0, 0)),           # w_lin row
                pl.BlockSpec((1, 1), lambda b, t, ml: (0, 0)),           # b_lin
            ],
            out_specs=pl.BlockSpec((tb, 1), lambda b, t, ml: (b, 0)),
            scratch_shapes=[
                pltpu.VMEM((tb, H), jnp.float32),    # h (f32 carry)
                pltpu.VMEM((tb, H), jnp.float32),    # c (f32 carry)
            ],
        ),
        compiler_params=pltpu.CompilerParams(
            dimension_semantics=("parallel", "arbitrary")),  # batch parallel, time sequential
    )(max_len, lengths2d, x, w_stacked, b_all, w_lin_row, b_lin)

    return out.reshape(-1)   # .flatten()


def minibatch_lstm_ref(x, lengths, params):
    """Pure-JAX f32 reference (same semantics as the PyTorch module)."""
    T, B, I = x.shape
    H = params["w_hh"].shape[1]
    w_ih_t = params["w_ih"].T
    w_hh_t = params["w_hh"].T
    b_all = params["b_ih"] + params["b_hh"]

    def step(carry, x_t):
        h, c = carry
        gates = x_t @ w_ih_t + h @ w_hh_t + b_all
        i_g = jax.nn.sigmoid(gates[:, 0 * H:1 * H])
        f_g = jax.nn.sigmoid(gates[:, 1 * H:2 * H])
        g_g = jnp.tanh(gates[:, 2 * H:3 * H])
        o_g = jax.nn.sigmoid(gates[:, 3 * H:4 * H])
        c_new = f_g * c + i_g * g_g
        h_new = o_g * jnp.tanh(c_new)
        return (h_new, c_new), h_new

    h0 = jnp.zeros((B, H), jnp.float32)
    c0 = jnp.zeros((B, H), jnp.float32)
    _, hs = jax.lax.scan(step, (h0, c0), x)        # (T, B, H)
    h_last = hs[lengths - 1, jnp.arange(B), :]     # (B, H)
    h_last = jax.nn.relu(h_last)
    out = h_last @ params["w_lin"].T + params["b_lin"]
    return out.reshape(-1)


def init_params(key, input_size, hidden_size):
    """Deterministic init mimicking PyTorch's U(-1/sqrt(H), 1/sqrt(H))."""
    ks = jax.random.split(key, 6)
    s = 1.0 / jnp.sqrt(hidden_size)
    return {
        "w_ih": jax.random.uniform(ks[0], (4 * hidden_size, input_size),
                                   jnp.float32, -s, s),
        "w_hh": jax.random.uniform(ks[1], (4 * hidden_size, hidden_size),
                                   jnp.float32, -s, s),
        "b_ih": jax.random.uniform(ks[2], (4 * hidden_size,), jnp.float32, -s, s),
        "b_hh": jax.random.uniform(ks[3], (4 * hidden_size,), jnp.float32, -s, s),
        "w_lin": jax.random.uniform(ks[4], (1, hidden_size), jnp.float32, -s, s),
        "b_lin": jax.random.uniform(ks[5], (1,), jnp.float32, -s, s),
    }


if __name__ == "__main__":
    T, B, I, H = 8, 4, 16, 32
    key = jax.random.PRNGKey(0)
    kx, kp = jax.random.split(key)

    x = jax.random.normal(kx, (T, B, I), jnp.float32)        # layout: (T, B, I)
    lengths = jnp.array([8, 5, 3, 7], jnp.int32)             # per-batch valid lengths
    params = init_params(kp, I, H)

    ref = minibatch_lstm_ref(x, lengths, params)

    # 1) exact-semantics check in f32 (two time chunks of 4 steps each)
    out_f32 = jax.block_until_ready(
        minibatch_lstm_pallas(x, lengths, params,
                              time_chunk=4, compute_dtype=jnp.float32))
    assert out_f32.shape == (B,)
    assert jnp.allclose(out_f32, ref, atol=1e-4, rtol=1e-4), (out_f32, ref)

    # 2) bf16 fast path (MXU-native weights/x, f32 accumulation) — looser tolerance
    out_bf16 = jax.block_until_ready(
        minibatch_lstm_pallas(x, lengths, params,
                              time_chunk=4, compute_dtype=jnp.bfloat16))
    assert jnp.allclose(out_bf16, ref, atol=5e-2, rtol=5e-2), (out_bf16, ref)

    # 3) exercise the max(lengths) early-skip path (second chunk is skipped entirely)
    lengths_short = jnp.array([3, 2, 1, 3], jnp.int32)
    ref_short = minibatch_lstm_ref(x, lengths_short, params)
    out_short = jax.block_until_ready(
        minibatch_lstm_pallas(x, lengths_short, params,
                              time_chunk=4, compute_dtype=jnp.float32))
    assert jnp.allclose(out_short, ref_short, atol=1e-4, rtol=1e-4), (out_short, ref_short)

    print("KERNEL_OK")
</pallas_src>

<mosaic_0001>
module attributes {stable_mosaic.version = 11 : i64} {
  func.func @_lstm_kernel(%arg0: i32, %arg1: i32, %arg2: memref<1xi32, #tpu.memory_space<smem>>, %arg3: memref<4x1xi32, #tpu.memory_space<vmem>>, %arg4: memref<4x4x16xf32, #tpu.memory_space<vmem>>, %arg5: memref<48x128xf32, #tpu.memory_space<vmem>>, %arg6: memref<1x128xf32, #tpu.memory_space<vmem>>, %arg7: memref<1x32xf32, #tpu.memory_space<vmem>>, %arg8: memref<1x1xf32, #tpu.memory_space<vmem>>, %arg9: memref<4x1xf32, #tpu.memory_space<vmem>>, %arg10: memref<4x32xf32, #tpu.memory_space<vmem>>, %arg11: memref<4x32xf32, #tpu.memory_space<vmem>>) attributes {dimension_semantics = [#tpu.dimension_semantics<parallel>, #tpu.dimension_semantics<arbitrary>], iteration_bounds = array<i64: 1, 2>, scalar_prefetch = 1 : i64, scratch_operands = 2 : i64, tpu.core_type = #tpu.core_type<tc>, window_params = [{transform_indices = @transform_0, window_bounds = array<i64: 4, 1>}, {transform_indices = @transform_1, window_bounds = array<i64: 4, 4, 16>}, {pipeline_mode = #tpu.pipeline_mode<synchronous>, transform_indices = @transform_2, window_bounds = array<i64: 48, 128>}, {pipeline_mode = #tpu.pipeline_mode<synchronous>, transform_indices = @transform_3, window_bounds = array<i64: 1, 128>}, {pipeline_mode = #tpu.pipeline_mode<synchronous>, transform_indices = @transform_4, window_bounds = array<i64: 1, 32>}, {pipeline_mode = #tpu.pipeline_mode<synchronous>, transform_indices = @transform_5, window_bounds = array<i64: 1, 1>}, {transform_indices = @transform_6, window_bounds = array<i64: 4, 1>}]} {
    %c4_i32 = arith.constant 4 : i32
    %0 = arith.muli %arg1, %c4_i32 : i32
    %c0_i32 = arith.constant 0 : i32
    %1 = arith.cmpi eq, %arg1, %c0_i32 : i32
    %2 = arith.extui %1 : i1 to i32
    %c0_i32_0 = arith.constant 0 : i32
    %3 = arith.cmpi ne, %2, %c0_i32_0 : i32
    scf.if %3 {
      %cst = arith.constant 0.000000e+00 : f32
      %11 = vector.broadcast %cst : f32 to vector<4x32xf32>
      %c0_3 = arith.constant 0 : index
      %c0_4 = arith.constant 0 : index
      %12 = vector.load %arg10[%c0_3, %c0_4] : memref<4x32xf32, #tpu.memory_space<vmem>>, vector<4x32xf32>
      tpu.vector_store %arg10[%c0_3, %c0_4], %11 {strides = array<i32>} : memref<4x32xf32, #tpu.memory_space<vmem>>, vector<4x32xf32>,
      %cst_5 = arith.constant 0.000000e+00 : f32
      %13 = vector.broadcast %cst_5 : f32 to vector<4x32xf32>
      %c0_6 = arith.constant 0 : index
      %c0_7 = arith.constant 0 : index
      %14 = vector.load %arg11[%c0_6, %c0_7] : memref<4x32xf32, #tpu.memory_space<vmem>>, vector<4x32xf32>
      tpu.vector_store %arg11[%c0_6, %c0_7], %13 {strides = array<i32>} : memref<4x32xf32, #tpu.memory_space<vmem>>, vector<4x32xf32>,
    } else {
    }
    %c0 = arith.constant 0 : index
    %4 = memref.load %arg2[%c0] : memref<1xi32, #tpu.memory_space<smem>>
    %5 = arith.cmpi slt, %0, %4 : i32
    %6 = arith.extui %5 : i1 to i32
    %c0_i32_1 = arith.constant 0 : i32
    %7 = arith.cmpi ne, %6, %c0_i32_1 : i32
    scf.if %7 {
      %c0_3 = arith.constant 0 : index
      %c0_4 = arith.constant 0 : index
      %11 = vector.load %arg3[%c0_3, %c0_4] : memref<4x1xi32, #tpu.memory_space<vmem>>, vector<4x1xi32>
      %c0_5 = arith.constant 0 : index
      %c0_6 = arith.constant 0 : index
      %12 = vector.load %arg5[%c0_5, %c0_6] : memref<48x128xf32, #tpu.memory_space<vmem>>, vector<48x128xf32>
      %c0_7 = arith.constant 0 : index
      %c0_8 = arith.constant 0 : index
      %13 = vector.load %arg6[%c0_7, %c0_8] : memref<1x128xf32, #tpu.memory_space<vmem>>, vector<1x128xf32>
      %c0_9 = arith.constant 0 : index
      %c0_10 = arith.constant 0 : index
      %14 = vector.load %arg10[%c0_9, %c0_10] : memref<4x32xf32, #tpu.memory_space<vmem>>, vector<4x32xf32>
      %c0_11 = arith.constant 0 : index
      %c0_12 = arith.constant 0 : index
      %15 = vector.load %arg11[%c0_11, %c0_12] : memref<4x32xf32, #tpu.memory_space<vmem>>, vector<4x32xf32>
      %c0_i32_13 = arith.constant 0 : i32
      %16 = arith.addi %0, %c0_i32_13 : i32
      %17 = arith.index_cast %c0_i32_13 : i32 to index
      %c0_14 = arith.constant 0 : index
      %c0_15 = arith.constant 0 : index
      %18 = vector.load %arg4[%17, %c0_14, %c0_15] : memref<4x4x16xf32, #tpu.memory_space<vmem>>, vector<1x4x16xf32>
      %19 = vector.shape_cast %18 : vector<1x4x16xf32> to vector<4x16xf32>
      %20 = tpu.concatenate %19, %14 in 1 : vector<4x16xf32>, vector<4x32xf32> -> vector<4x48xf32>
      %cst = arith.constant dense<0.000000e+00> : vector<4x128xf32>
      %21 = tpu.matmul %20, %12, %cst {dimension_numbers = #tpu.dot_dimension_numbers<[1], [0], [0], [1], [0, 0, 1, 1], [], []>} : vector<4x48xf32>, vector<48x128xf32>, vector<4x128xf32> -> vector<4x128xf32>
      %22 = vector.broadcast %13 : vector<1x128xf32> to vector<4x128xf32>
      %23 = arith.addf %21, %22 : vector<4x128xf32>
      %24 = vector.extract_strided_slice %23 {offsets = [0, 0], sizes = [4, 32], strides = [1, 1]} : vector<4x128xf32> to vector<4x32xf32>
      %25 = arith.negf %24 : vector<4x32xf32>
      %26 = math.exp %25 : vector<4x32xf32>
      %cst_16 = arith.constant 1.000000e+00 : f32
      %27 = vector.broadcast %cst_16 : f32 to vector<4x32xf32>
      %28 = arith.addf %27, %26 : vector<4x32xf32>
      %29 = arith.divf %27, %28 : vector<4x32xf32>
      %30 = vector.extract_strided_slice %23 {offsets = [0, 32], sizes = [4, 32], strides = [1, 1]} : vector<4x128xf32> to vector<4x32xf32>
      %31 = arith.negf %30 : vector<4x32xf32>
      %32 = math.exp %31 : vector<4x32xf32>
      %cst_17 = arith.constant 1.000000e+00 : f32
      %33 = vector.broadcast %cst_17 : f32 to vector<4x32xf32>
      %34 = arith.addf %33, %32 : vector<4x32xf32>
      %35 = arith.divf %33, %34 : vector<4x32xf32>
      %36 = vector.extract_strided_slice %23 {offsets = [0, 64], sizes = [4, 32], strides = [1, 1]} : vector<4x128xf32> to vector<4x32xf32>
      %37 = math.tanh %36 : vector<4x32xf32>
      %38 = vector.extract_strided_slice %23 {offsets = [0, 96], sizes = [4, 32], strides = [1, 1]} : vector<4x128xf32> to vector<4x32xf32>
      %39 = arith.negf %38 : vector<4x32xf32>
      %40 = math.exp %39 : vector<4x32xf32>
      %cst_18 = arith.constant 1.000000e+00 : f32
      %41 = vector.broadcast %cst_18 : f32 to vector<4x32xf32>
      %42 = arith.addf %41, %40 : vector<4x32xf32>
      %43 = arith.divf %41, %42 : vector<4x32xf32>
      %44 = arith.mulf %35, %15 : vector<4x32xf32>
      %45 = arith.mulf %29, %37 : vector<4x32xf32>
      %46 = arith.addf %44, %45 : vector<4x32xf32>
      %47 = math.tanh %46 : vector<4x32xf32>
      %48 = arith.mulf %43, %47 : vector<4x32xf32>
      %49 = vector.broadcast %16 : i32 to vector<4x1xi32>
      %50 = arith.cmpi slt, %49, %11 : vector<4x1xi32>
      %51 = vector.shape_cast %50 : vector<4x1xi1> to vector<4x1xi1>
      %52 = vector.broadcast %51 : vector<4x1xi1> to vector<4x32xi1>
      %53 = arith.select %52, %48, %14 : vector<4x32xi1>, vector<4x32xf32>
      %54 = vector.shape_cast %50 : vector<4x1xi1> to vector<4x1xi1>
      %55 = vector.broadcast %54 : vector<4x1xi1> to vector<4x32xi1>
      %56 = arith.select %55, %46, %15 : vector<4x32xi1>, vector<4x32xf32>
      %c1_i32_19 = arith.constant 1 : i32
      %57 = arith.addi %0, %c1_i32_19 : i32
      %58 = arith.index_cast %c1_i32_19 : i32 to index
      %c0_20 = arith.constant 0 : index
      %c0_21 = arith.constant 0 : index
      %59 = vector.load %arg4[%58, %c0_20, %c0_21] : memref<4x4x16xf32, #tpu.memory_space<vmem>>, vector<1x4x16xf32>
      %60 = vector.shape_cast %59 : vector<1x4x16xf32> to vector<4x16xf32>
      %61 = tpu.concatenate %60, %53 in 1 : vector<4x16xf32>, vector<4x32xf32> -> vector<4x48xf32>
      %cst_22 = arith.constant dense<0.000000e+00> : vector<4x128xf32>
      %62 = tpu.matmul %61, %12, %cst_22 {dimension_numbers = #tpu.dot_dimension_numbers<[1], [0], [0], [1], [0, 0, 1, 1], [], []>} : vector<4x48xf32>, vector<48x128xf32>, vector<4x128xf32> -> vector<4x128xf32>
      %63 = vector.broadcast %13 : vector<1x128xf32> to vector<4x128xf32>
      %64 = arith.addf %62, %63 : vector<4x128xf32>
      %65 = vector.extract_strided_slice %64 {offsets = [0, 0], sizes = [4, 32], strides = [1, 1]} : vector<4x128xf32> to vector<4x32xf32>
      %66 = arith.negf %65 : vector<4x32xf32>
      %67 = math.exp %66 : vector<4x32xf32>
      %cst_23 = arith.constant 1.000000e+00 : f32
      %68 = vector.broadcast %cst_23 : f32 to vector<4x32xf32>
      %69 = arith.addf %68, %67 : vector<4x32xf32>
      %70 = arith.divf %68, %69 : vector<4x32xf32>
      %71 = vector.extract_strided_slice %64 {offsets = [0, 32], sizes = [4, 32], strides = [1, 1]} : vector<4x128xf32> to vector<4x32xf32>
      %72 = arith.negf %71 : vector<4x32xf32>
      %73 = math.exp %72 : vector<4x32xf32>
      %cst_24 = arith.constant 1.000000e+00 : f32
      %74 = vector.broadcast %cst_24 : f32 to vector<4x32xf32>
      %75 = arith.addf %74, %73 : vector<4x32xf32>
      %76 = arith.divf %74, %75 : vector<4x32xf32>
      %77 = vector.extract_strided_slice %64 {offsets = [0, 64], sizes = [4, 32], strides = [1, 1]} : vector<4x128xf32> to vector<4x32xf32>
      %78 = math.tanh %77 : vector<4x32xf32>
      %79 = vector.extract_strided_slice %64 {offsets = [0, 96], sizes = [4, 32], strides = [1, 1]} : vector<4x128xf32> to vector<4x32xf32>
      %80 = arith.negf %79 : vector<4x32xf32>
      %81 = math.exp %80 : vector<4x32xf32>
      %cst_25 = arith.constant 1.000000e+00 : f32
      %82 = vector.broadcast %cst_25 : f32 to vector<4x32xf32>
      %83 = arith.addf %82, %81 : vector<4x32xf32>
      %84 = arith.divf %82, %83 : vector<4x32xf32>
      %85 = arith.mulf %76, %56 : vector<4x32xf32>
      %86 = arith.mulf %70, %78 : vector<4x32xf32>
      %87 = arith.addf %85, %86 : vector<4x32xf32>
      %88 = math.tanh %87 : vector<4x32xf32>
      %89 = arith.mulf %84, %88 : vector<4x32xf32>
      %90 = vector.broadcast %57 : i32 to vector<4x1xi32>
      %91 = arith.cmpi slt, %90, %11 : vector<4x1xi32>
      %92 = vector.shape_cast %91 : vector<4x1xi1> to vector<4x1xi1>
      %93 = vector.broadcast %92 : vector<4x1xi1> to vector<4x32xi1>
      %94 = arith.select %93, %89, %53 : vector<4x32xi1>, vector<4x32xf32>
      %95 = vector.shape_cast %91 : vector<4x1xi1> to vector<4x1xi1>
      %96 = vector.broadcast %95 : vector<4x1xi1> to vector<4x32xi1>
      %97 = arith.select %96, %87, %56 : vector<4x32xi1>, vector<4x32xf32>
      %c2_i32 = arith.constant 2 : i32
      %98 = arith.addi %0, %c2_i32 : i32
      %99 = arith.index_cast %c2_i32 : i32 to index
      %c0_26 = arith.constant 0 : index
      %c0_27 = arith.constant 0 : index
      %100 = vector.load %arg4[%99, %c0_26, %c0_27] : memref<4x4x16xf32, #tpu.memory_space<vmem>>, vector<1x4x16xf32>
      %101 = vector.shape_cast %100 : vector<1x4x16xf32> to vector<4x16xf32>
      %102 = tpu.concatenate %101, %94 in 1 : vector<4x16xf32>, vector<4x32xf32> -> vector<4x48xf32>
      %cst_28 = arith.constant dense<0.000000e+00> : vector<4x128xf32>
      %103 = tpu.matmul %102, %12, %cst_28 {dimension_numbers = #tpu.dot_dimension_numbers<[1], [0], [0], [1], [0, 0, 1, 1], [], []>} : vector<4x48xf32>, vector<48x128xf32>, vector<4x128xf32> -> vector<4x128xf32>
      %104 = vector.broadcast %13 : vector<1x128xf32> to vector<4x128xf32>
      %105 = arith.addf %103, %104 : vector<4x128xf32>
      %106 = vector.extract_strided_slice %105 {offsets = [0, 0], sizes = [4, 32], strides = [1, 1]} : vector<4x128xf32> to vector<4x32xf32>
      %107 = arith.negf %106 : vector<4x32xf32>
      %108 = math.exp %107 : vector<4x32xf32>
      %cst_29 = arith.constant 1.000000e+00 : f32
      %109 = vector.broadcast %cst_29 : f32 to vector<4x32xf32>
      %110 = arith.addf %109, %108 : vector<4x32xf32>
      %111 = arith.divf %109, %110 : vector<4x32xf32>
      %112 = vector.extract_strided_slice %105 {offsets = [0, 32], sizes = [4, 32], strides = [1, 1]} : vector<4x128xf32> to vector<4x32xf32>
      %113 = arith.negf %112 : vector<4x32xf32>
      %114 = math.exp %113 : vector<4x32xf32>
      %cst_30 = arith.constant 1.000000e+00 : f32
      %115 = vector.broadcast %cst_30 : f32 to vector<4x32xf32>
      %116 = arith.addf %115, %114 : vector<4x32xf32>
      %117 = arith.divf %115, %116 : vector<4x32xf32>
      %118 = vector.extract_strided_slice %105 {offsets = [0, 64], sizes = [4, 32], strides = [1, 1]} : vector<4x128xf32> to vector<4x32xf32>
      %119 = math.tanh %118 : vector<4x32xf32>
      %120 = vector.extract_strided_slice %105 {offsets = [0, 96], sizes = [4, 32], strides = [1, 1]} : vector<4x128xf32> to vector<4x32xf32>
      %121 = arith.negf %120 : vector<4x32xf32>
      %122 = math.exp %121 : vector<4x32xf32>
      %cst_31 = arith.constant 1.000000e+00 : f32
      %123 = vector.broadcast %cst_31 : f32 to vector<4x32xf32>
      %124 = arith.addf %123, %122 : vector<4x32xf32>
      %125 = arith.divf %123, %124 : vector<4x32xf32>
      %126 = arith.mulf %117, %97 : vector<4x32xf32>
      %127 = arith.mulf %111, %119 : vector<4x32xf32>
      %128 = arith.addf %126, %127 : vector<4x32xf32>
      %129 = math.tanh %128 : vector<4x32xf32>
      %130 = arith.mulf %125, %129 : vector<4x32xf32>
      %131 = vector.broadcast %98 : i32 to vector<4x1xi32>
      %132 = arith.cmpi slt, %131, %11 : vector<4x1xi32>
      %133 = vector.shape_cast %132 : vector<4x1xi1> to vector<4x1xi1>
      %134 = vector.broadcast %133 : vector<4x1xi1> to vector<4x32xi1>
      %135 = arith.select %134, %130, %94 : vector<4x32xi1>, vector<4x32xf32>
      %136 = vector.shape_cast %132 : vector<4x1xi1> to vector<4x1xi1>
      %137 = vector.broadcast %136 : vector<4x1xi1> to vector<4x32xi1>
      %138 = arith.select %137, %128, %97 : vector<4x32xi1>, vector<4x32xf32>
      %c3_i32 = arith.constant 3 : i32
      %139 = arith.addi %0, %c3_i32 : i32
      %140 = arith.index_cast %c3_i32 : i32 to index
      %c0_32 = arith.constant 0 : index
      %c0_33 = arith.constant 0 : index
      %141 = vector.load %arg4[%140, %c0_32, %c0_33] : memref<4x4x16xf32, #tpu.memory_space<vmem>>, vector<1x4x16xf32>
      %142 = vector.shape_cast %141 : vector<1x4x16xf32> to vector<4x16xf32>
      %143 = tpu.concatenate %142, %135 in 1 : vector<4x16xf32>, vector<4x32xf32> -> vector<4x48xf32>
      %cst_34 = arith.constant dense<0.000000e+00> : vector<4x128xf32>
      %144 = tpu.matmul %143, %12, %cst_34 {dimension_numbers = #tpu.dot_dimension_numbers<[1], [0], [0], [1], [0, 0, 1, 1], [], []>} : vector<4x48xf32>, vector<48x128xf32>, vector<4x128xf32> -> vector<4x128xf32>
      %145 = vector.broadcast %13 : vector<1x128xf32> to vector<4x128xf32>
      %146 = arith.addf %144, %145 : vector<4x128xf32>
      %147 = vector.extract_strided_slice %146 {offsets = [0, 0], sizes = [4, 32], strides = [1, 1]} : vector<4x128xf32> to vector<4x32xf32>
      %148 = arith.negf %147 : vector<4x32xf32>
      %149 = math.exp %148 : vector<4x32xf32>
      %cst_35 = arith.constant 1.000000e+00 : f32
      %150 = vector.broadcast %cst_35 : f32 to vector<4x32xf32>
      %151 = arith.addf %150, %149 : vector<4x32xf32>
      %152 = arith.divf %150, %151 : vector<4x32xf32>
      %153 = vector.extract_strided_slice %146 {offsets = [0, 32], sizes = [4, 32], strides = [1, 1]} : vector<4x128xf32> to vector<4x32xf32>
      %154 = arith.negf %153 : vector<4x32xf32>
      %155 = math.exp %154 : vector<4x32xf32>
      %cst_36 = arith.constant 1.000000e+00 : f32
      %156 = vector.broadcast %cst_36 : f32 to vector<4x32xf32>
      %157 = arith.addf %156, %155 : vector<4x32xf32>
      %158 = arith.divf %156, %157 : vector<4x32xf32>
      %159 = vector.extract_strided_slice %146 {offsets = [0, 64], sizes = [4, 32], strides = [1, 1]} : vector<4x128xf32> to vector<4x32xf32>
      %160 = math.tanh %159 : vector<4x32xf32>
      %161 = vector.extract_strided_slice %146 {offsets = [0, 96], sizes = [4, 32], strides = [1, 1]} : vector<4x128xf32> to vector<4x32xf32>
      %162 = arith.negf %161 : vector<4x32xf32>
      %163 = math.exp %162 : vector<4x32xf32>
      %cst_37 = arith.constant 1.000000e+00 : f32
      %164 = vector.broadcast %cst_37 : f32 to vector<4x32xf32>
      %165 = arith.addf %164, %163 : vector<4x32xf32>
      %166 = arith.divf %164, %165 : vector<4x32xf32>
      %167 = arith.mulf %158, %138 : vector<4x32xf32>
      %168 = arith.mulf %152, %160 : vector<4x32xf32>
      %169 = arith.addf %167, %168 : vector<4x32xf32>
      %170 = math.tanh %169 : vector<4x32xf32>
      %171 = arith.mulf %166, %170 : vector<4x32xf32>
      %172 = vector.broadcast %139 : i32 to vector<4x1xi32>
      %173 = arith.cmpi slt, %172, %11 : vector<4x1xi32>
      %174 = vector.shape_cast %173 : vector<4x1xi1> to vector<4x1xi1>
      %175 = vector.broadcast %174 : vector<4x1xi1> to vector<4x32xi1>
      %176 = arith.select %175, %171, %135 : vector<4x32xi1>, vector<4x32xf32>
      %177 = vector.shape_cast %173 : vector<4x1xi1> to vector<4x1xi1>
      %178 = vector.broadcast %177 : vector<4x1xi1> to vector<4x32xi1>
      %179 = arith.select %178, %169, %138 : vector<4x32xi1>, vector<4x32xf32>
      %c4_i32_38 = arith.constant 4 : i32
      %c0_39 = arith.constant 0 : index
      %c0_40 = arith.constant 0 : index
      %180 = vector.load %arg10[%c0_39, %c0_40] : memref<4x32xf32, #tpu.memory_space<vmem>>, vector<4x32xf32>
      tpu.vector_store %arg10[%c0_39, %c0_40], %176 {strides = array<i32>} : memref<4x32xf32, #tpu.memory_space<vmem>>, vector<4x32xf32>,
      %c0_41 = arith.constant 0 : index
      %c0_42 = arith.constant 0 : index
      %181 = vector.load %arg11[%c0_41, %c0_42] : memref<4x32xf32, #tpu.memory_space<vmem>>, vector<4x32xf32>
      tpu.vector_store %arg11[%c0_41, %c0_42], %179 {strides = array<i32>} : memref<4x32xf32, #tpu.memory_space<vmem>>, vector<4x32xf32>,
    } else {
    }
    %c1_i32 = arith.constant 1 : i32
    %8 = arith.cmpi eq, %arg1, %c1_i32 : i32
    %9 = arith.extui %8 : i1 to i32
    %c0_i32_2 = arith.constant 0 : i32
    %10 = arith.cmpi ne, %9, %c0_i32_2 : i32
    scf.if %10 {
      %c0_3 = arith.constant 0 : index
      %c0_4 = arith.constant 0 : index
      %11 = vector.load %arg10[%c0_3, %c0_4] : memref<4x32xf32, #tpu.memory_space<vmem>>, vector<4x32xf32>
      %cst = arith.constant 0.000000e+00 : f32
      %12 = vector.broadcast %cst : f32 to vector<4x32xf32>
      %13 = arith.maximumf %11, %12 : vector<4x32xf32>
      %c0_5 = arith.constant 0 : index
      %c0_6 = arith.constant 0 : index
      %14 = vector.load %arg7[%c0_5, %c0_6] : memref<1x32xf32, #tpu.memory_space<vmem>>, vector<1x32xf32>
      %15 = vector.broadcast %14 : vector<1x32xf32> to vector<4x32xf32>
      %16 = arith.mulf %13, %15 : vector<4x32xf32>
      %cst_7 = arith.constant dense<0.000000e+00> : vector<4xf32>
      %17 = vector.multi_reduction <add>, %16, %cst_7 [1] : vector<4x32xf32> to vector<4xf32>
      %18 = vector.shape_cast %17 : vector<4xf32> to vector<4x1xf32>
      %c0_8 = arith.constant 0 : index
      %c0_9 = arith.constant 0 : index
      %19 = vector.load %arg8[%c0_8, %c0_9] : memref<1x1xf32, #tpu.memory_space<vmem>>, vector<1x1xf32>
      %20 = vector.broadcast %19 : vector<1x1xf32> to vector<4x1xf32>
      %21 = arith.addf %18, %20 : vector<4x1xf32>
      %c0_10 = arith.constant 0 : index
      %c0_11 = arith.constant 0 : index
      %22 = vector.load %arg9[%c0_10, %c0_11] : memref<4x1xf32, #tpu.memory_space<vmem>>, vector<4x1xf32>
      tpu.vector_store %arg9[%c0_10, %c0_11], %21 {strides = array<i32>} : memref<4x1xf32, #tpu.memory_space<vmem>>, vector<4x1xf32>,
    } else {
    }
    return
  }
  func.func @transform_0(%arg0: i32, %arg1: i32, %arg2: memref<1xi32, #tpu.memory_space<smem>>) -> (i32, i32) {
    %c0_i32 = arith.constant 0 : i32
    %c0_i32_0 = arith.constant 0 : i32
    return %arg0, %c0_i32 : i32, i32
  }
  func.func @transform_1(%arg0: i32, %arg1: i32, %arg2: memref<1xi32, #tpu.memory_space<smem>>) -> (i32, i32, i32) {
    %c0_i32 = arith.constant 0 : i32
    %c0_i32_0 = arith.constant 0 : i32
    return %arg1, %arg0, %c0_i32 : i32, i32, i32
  }
  func.func @transform_2(%arg0: i32, %arg1: i32, %arg2: memref<1xi32, #tpu.memory_space<smem>>) -> (i32, i32) {
    %c0_i32 = arith.constant 0 : i32
    %c0_i32_0 = arith.constant 0 : i32
    %c0_i32_1 = arith.constant 0 : i32
    return %c0_i32, %c0_i32_0 : i32, i32
  }
  func.func @transform_3(%arg0: i32, %arg1: i32, %arg2: memref<1xi32, #tpu.memory_space<smem>>) -> (i32, i32) {
    %c0_i32 = arith.constant 0 : i32
    %c0_i32_0 = arith.constant 0 : i32
    %c0_i32_1 = arith.constant 0 : i32
    return %c0_i32, %c0_i32_0 : i32, i32
  }
  func.func @transform_4(%arg0: i32, %arg1: i32, %arg2: memref<1xi32, #tpu.memory_space<smem>>) -> (i32, i32) {
    %c0_i32 = arith.constant 0 : i32
    %c0_i32_0 = arith.constant 0 : i32
    %c0_i32_1 = arith.constant 0 : i32
    return %c0_i32, %c0_i32_0 : i32, i32
  }
  func.func @transform_5(%arg0: i32, %arg1: i32, %arg2: memref<1xi32, #tpu.memory_space<smem>>) -> (i32, i32) {
    %c0_i32 = arith.constant 0 : i32
    %c0_i32_0 = arith.constant 0 : i32
    %c0_i32_1 = arith.constant 0 : i32
    return %c0_i32, %c0_i32_0 : i32, i32
  }
  func.func @transform_6(%arg0: i32, %arg1: i32, %arg2: memref<1xi32, #tpu.memory_space<smem>>) -> (i32, i32) {
    %c0_i32 = arith.constant 0 : i32
    %c0_i32_0 = arith.constant 0 : i32
    return %arg0, %c0_i32 : i32, i32
  }
}

</mosaic_0001>

<bundles_post_ra>
// kernel: tpu_custom_call.1
= control target key start
LH: loop header
LB: loop body
LE: loop exit
PB: predicated region body
PF: predicated region fallthrough
CT: control target
= control target key end

     0   :  { %s1671_s0 = inlined_call_operand.<no memory space> [shape: s32[1], index: 0, kind: input, shape index: {}]   ;;  %s1672_s1 = inlined_call_operand.vmem [shape: s32[4,1], index: 1, kind: input, shape index: {}]   ;;  %s1673_s2 = inlined_call_operand.hbm [shape: f32[8,4,16], index: 2, kind: input, shape index: {}]   ;;  %s1674_s3 = inlined_call_operand.hbm [shape: f32[48,128], index: 3, kind: input, shape index: {}]   ;;  %s1675_s4 = inlined_call_operand.vmem [shape: f32[1,128], index: 4, kind: input, shape index: {}]   ;;  %s1676_s5 = inlined_call_operand.vmem [shape: f32[1,32], index: 5, kind: input, shape index: {}]   ;;  %s1677_s6 = inlined_call_operand.<no memory space> [shape: f32[1,1], index: 6, kind: input, shape index: {}]   ;;  %s1678_s7 = inlined_call_operand.vmem [shape: f32[4,1], index: 7, kind: output, shape index: {}]  }
   0x1   :  { %12 = sst [smem:[#allocation5]] %s1671_s0  ;;  %v13_v0 = vstv %s1677_s6 }
   0x2   :  { %14 = vst [vmem:[#allocation6] sm:$0x1] %v13_v0 }
   0x3   :  { %15 = vsyncpa [#allocation8], 0 }
   0x4   :  { %17 = vsyncpa [#allocation8 + $0x1], 0 }
   0x5   :  { %18 = vsyncpa [#allocation10], 0  ;;  %s1397_s28 = smov 0   ;;  %s1399_s29 = smov 0  }
   0x6   :  { %s1401_s30 = smov 0   ;;  %s1403_s8 = smov 0  }
   0x7   :  { %s1405_s9 = smov 0   ;;  %s1407_s10 = smov 0  }
   0x8 LB: > { %s950_s0 = sadd.s32 4294967295, %s1333_s10   ;;  %p84_p0 = scmp.ne.s32.totalorder %s1317_s29, %s1313_s28  ;;  %s1333_s10 = sphi %s1407_s10, %s24_s10   ;;  %s1329_s9 = sphi %s1405_s9, %s1695_s9   ;;  %s1325_s8 = sphi %s1403_s8, %s1694_s8   ;;  %s1321_s30 = sphi %s1401_s30, %s1693_s30   ;;  %s1317_s29 = sphi %s1399_s29, %s1692_s29   ;;  %s1313_s28 = sphi %s1397_s28, %s1691_s28  }
   0x9   : > { %p1427_p1 = scmp.eq.s32.totalorder %s950_s0, 0  ;;  %p951_p2 = scmp.ge.s32.totalorder %s1333_s10, 1 }
   0xa   : > { %p205_p3 = scmp.lt.s32.totalorder %s1333_s10, 3  ;;  %s1335_s13 = smov [#allocation9]  }
   0xb   : > { %s1683_s6 = scalar_select %p1427_p1, 1, 0 }
   0xc   : > { %p1435_p4 = por %p1427_p1, %p84_p0  ;;  %p1439_p5 = pnand %p951_p2, %p205_p3 }
   0xd   : > { %s224_s14 = sshll.u32 %s1335_s13, 4  ;;  %s33_s16 = sadd.s32 1, %s1329_s9  ;;  %s225_s14 = int_to_ptr.vmem [resolvable:$true] %s224_s14 }
   0xe   : > { %s1684_s11 = scalar_select %p1435_p4, 1, 0 }
   0xf   : > { %s1685_s12 = scalar_select %p1439_p5, 1, 0 }
  0x10   : > { %p1113_p6 = pneg %p1439_p5  ;;  %s1221_s19 = scalar_lea.hbm %s1674_s3, 768 }
  0x11   : > { %p1222_p8 = scmp.ne.s32.totalorder %s1674_s3, %s1221_s19  ;;  %p1228_p12 = scmp.lt.u32.totalorder %s1221_s19, %s1674_s3 }
  0x12   : > { %p1447_p7 = pnand %p1113_p6, %p1427_p1 }
  0x14   : > { %p1223_p9 = pneg %p1447_p7 }
  0x16   : > { %p1224_p10 = pnand %p1223_p9, %p1222_p8 }
  0x18   : > { %p1225_p11 = pneg %p1224_p10 }
  0x1a   : > { %p1230_p13 = pnand %p1228_p12, %p1225_p11 }
  0x1c   : > { %1233 = shalt.err (!%p1230_p13)
}
  0x1d   : > { %s1234_s24 = scalar_lea.vmem %s225_s14, 768  ;;  %p1242_p6 = scmp.lt.s32.totalorder %s225_s14, %s225_s14 }
  0x1e   : > { %p1235_p0 = scmp.ne.s32.totalorder %s225_s14, %s1234_s24  ;;  %p1243_p1 = scmp.lt.s32.totalorder %s1234_s24, %s1234_s24 }
  0x20   : > { %p1237_p2 = pnand %p1235_p0, %p1223_p9  ;;  %p1244_p4 = por %p1243_p1, %p1242_p6 }
  0x22   : > { %p1238_p3 = pneg %p1237_p2 }
  0x24   : > { %p1245_p5 = pnand %p1244_p4, %p1238_p3 }
  0x26   : > { %1248 = shalt.err (!%p1245_p5)
}
  0x27   : > { %s1336_s25 = smov 128   ;;  %s1337_s26 = smov 8  }
  0x28   : > { %1116 = dma.hbm_to_vmem [thread:$0]  (!%p1447_p7), %s1674_s3, 768, %s225_s14, [#allocation10], %s1336_s25, %s1336_s25, %s1337_s26  }
  0x29   : > { %p34_p1 = scmp.ge.s32.totalorder %s33_s16, 2  ;;  %s71_s0 = sadd.s32 1, %s1321_s30 }
  0x2a   : > { %p78_p4 = scmp.ne.s32.totalorder %s1321_s30, %s1317_s29  ;;  %p79_p5 = scmp.eq.s32.totalorder %s1333_s10, 0 }
  0x2b   : > { %s1697_s16 = smov (%p34_p1, %s33_s16), 0  ;;  %p1122_p9 = scmp.lt.s32.totalorder %s1333_s10, 2 }
  0x2c   : > { %p80_p8 = por %p79_p5, %p78_p4  ;;  %s66_s13 = ssub.s32 %s1329_s9, %s1697_s16 }
  0x2d   : > { %s247_s17 = sand.u32 1, %s1321_s30   ;;  %p69_p10 = scmp.eq.s32.totalorder %s66_s13, 0 }
  0x2e   : > { %s955_s18 = sshll.u32 %s247_s17, 4  ;;  %s982_s19 = sshll.u32 %s1329_s9, 8 }
  0x2f   : > { %s1480_s20 = scalar_select %p69_p10, %s1321_s30, %s71_s0  }
  0x30   : > { %s1485_s14 = scalar_lea.hbm %s1673_s2, %s982_s19  ;;  %s251_s22 = scalar_lea.vmem [#allocation7], %s955_s18 }
  0x31   : > { %s259_s23 = sshll.u32 %s251_s22, 4  ;;  %p1487_p7 = pnand %p1122_p9, %p80_p8  ;;  %s1491_s23 = int_to_ptr.vmem [resolvable:$true] %s259_s23 }
  0x32   : > { %s1493_s25 = scalar_lea.sflag [#allocation8], %s247_s17  ;;  %s1249_s26 = scalar_lea.hbm %s1485_s14, 256 }
  0x33   : > { %p1250_p11 = scmp.ne.s32.totalorder %s1485_s14, %s1249_s26  ;;  %p1251_p12 = pneg %p1487_p7 }
  0x34   : > { %s1254_s0 = scalar_lea.hbm %s1673_s2, 512  ;;  %p1255_p2 = scmp.lt.u32.totalorder %s1485_s14, %s1673_s2 }
  0x35   : > { %p1252_p13 = pnand %p1251_p12, %p1250_p11  ;;  %p1256_p3 = scmp.lt.u32.totalorder %s1254_s0, %s1249_s26 }
  0x36   : > { %p1258_p1 = scmp.lt.u32.totalorder %s1249_s26, %s1485_s14 }
  0x37   : > { %p1253_p0 = pneg %p1252_p13  ;;  %p1257_p6 = por %p1256_p3, %p1255_p2 }
  0x39   : > { %p1259_p4 = por %p1258_p1, %p1257_p6 }
  0x3b   : > { %p1260_p5 = pnand %p1259_p4, %p1253_p0 }
  0x3d   : > { %1263 = shalt.err (!%p1260_p5)
}
  0x3e   : > { %s1264_s17 = scalar_lea.vmem %s1491_s23, 256  ;;  %s1338_s19 = smov [#allocation7]  }
  0x3f   : > { %p1265_p8 = scmp.ne.s32.totalorder %s1491_s23, %s1264_s17  ;;  %s1269_s15 = sshll.u32 %s1338_s19, 4  ;;  %s1270_s15 = int_to_ptr.vmem [resolvable:$false] %s1269_s15 }
  0x40   : > { %s1271_s21 = scalar_lea.vmem %s1270_s15, 512  ;;  %p1272_p11 = scmp.lt.s32.totalorder %s1491_s23, %s1270_s15 }
  0x41   : > { %p1267_p9 = pnand %p1265_p8, %p1251_p12  ;;  %p1273_p13 = scmp.lt.s32.totalorder %s1271_s21, %s1264_s17 }
  0x43   : > { %p1268_p10 = pneg %p1267_p9  ;;  %p1274_p2 = por %p1273_p13, %p1272_p11 }
  0x45   : > { %p1275_p3 = pnand %p1274_p2, %p1268_p10 }
  0x47   : > { %1278 = shalt.err (!%p1275_p3)
}
  0x48   : > { %s1339_s22 = smov 64   ;;  %s1340_s26 = smov 4  }
  0x49   : > { %1120 = dma.hbm_to_vmem [thread:$0]  (!%p1487_p7), %s1485_s14, 256, %s1491_s23, %s1493_s25, %s1339_s22, %s1339_s22, %s1340_s26  }
  0x4a   : > { %p1688_p12 = scmp.ne.s32.totalorder %s1685_s12, 0 }
  0x4b   : > { %s273_s27 = sand.u32 (!%p1688_p12), 1, %s1317_s29   ;;  %p1689_p0 = scmp.ne.s32.totalorder (!%p1688_p12), %s1684_s11, 0 }
  0x4c   : > { %271 = sbr.rel (%p1688_p12) target bundleno = 3195 (0xc7b), region = 44  ;;  %s959_s28 = sshll.u32 (!%p1688_p12), %s273_s27, 4 }
  0x4d   : > { %s274_s0 = scalar_lea.sflag (!%p1688_p12), [#allocation8], %s273_s27  ;;  %s1524_s13 = scalar_lea.vmem (!%p1688_p12), [#allocation7], %s959_s28 }
  0x53   : > { %1304 = dma.done.wait (%p1689_p0), %s274_s0, 256  }
  0x54   : > { %1306 = vsyncadd (%p1689_p0), %s274_s0, 4294967040  ;;  %p1690_p6 = scmp.ne.s32.totalorder %s1683_s6, 0 }
  0x56   : > { %1308 = dma.done.wait (%p1690_p6), [#allocation10], 768  }
  0x57   : > { %1310 = vsyncadd (%p1690_p6), [#allocation10], 4294966528  ;;  %s1535_s12 = sshll.u32 %s1325_s8, 2  ;;  %p962_p7 = scmp.ne.s32.totalorder %s1325_s8, 0 }
  0x58   : > { %vm327_vm0 = vcmask (!%p962_p7), 257024   ;;  %v1341_v1 = vmov (!%p962_p7), 0.0  }
  0x59   : > { %326 = sbr.rel (%p962_p7) target bundleno = 96 (0x60), region = 56  ;;  %328 = vst.msk [vmem:[#allocation2] sm:$0xf] (!%p962_p7), %vm327_vm0, %v1341_v1  ;;  %329 = vst.msk [vmem:[#allocation3] sm:$0xf] (!%p962_p7), %vm327_vm0, %v1341_v1 }
  0x60 PF: > { %s330_s14 = sld [smem:[#allocation5]] }
  0x66   : > { %p963_p1 = scmp.ge.s32.totalorder %s1535_s12, %s330_s14 }
  0x67   : > { %v1539_v2 = vld [vmem:[#allocation2] sm:$0xf] (!%p963_p1)  ;;  %v336_v3 = vld [vmem:[#allocation9] sm:$0xff] (!%p963_p1)  ;;  %v337_v4 = vld [vmem:[#allocation9 + $0x8] sm:$0xff] (!%p963_p1)  ;;  %s1342_s6 = smov (!%p963_p1), 16   ;;  %v1343_v5 = vmov (!%p963_p1), 0.0|0.0   ;;  %v460_v24 = vstv (!%p963_p1), %s1535_s12 }
  0x68   : > { %334 = sbr.rel (%p963_p1) target bundleno = 3038 (0xbde), region = 60  ;;  %347 = vrot.lane.b32.xlu0 (!%p963_p1), %v1539_v2, %s1342_s6  ;;  %1071 = vmatprep.subr.bf16.mxu0 (!%p963_p1), %v1343_v5  ;;  %v1543_v6 = vpack.c.bf16 (!%p963_p1), %v337_v4, %v336_v3  ;;  %v338_v7 = vld [vmem:[#allocation9 + $0x10] sm:$0xff] (!%p963_p1)  ;;  %v339_v8 = vld [vmem:[#allocation9 + $0x18] sm:$0xff] (!%p963_p1)  ;;  %vm1344_vm1 = vmmov (!%p963_p1), 0   ;;  %v1345_v9 = vmov (!%p963_p1), 0.0   ;;  %v340_v12 = vld [vmem:[#allocation9 + $0x20] sm:$0xff] (!%p963_p1) }
  0x69   : > { %1023 = vmatprep.mubr.msk.f32.mxu0 (!%p963_p1), %vm1344_vm1, %v1345_v9  ;;  %v344_v10 = vld [vmem:[#allocation3] sm:$0xf] (!%p963_p1)  ;;  %1080 = vmatprep.subr.bf16.mxu1 (!%p963_p1), %v1343_v5  ;;  %v1549_v11 = vpack.c.bf16 (!%p963_p1), %v339_v8, %v338_v7  ;;  %v341_v13 = vld [vmem:[#allocation9 + $0x28] sm:$0xff] (!%p963_p1)  ;;  %s1346_s11 = smov (!%p963_p1), 32   ;;  %v345_v15 = vld [vmem:[%s1524_s13] sm:$0xf] (!%p963_p1) }
  0x6a   : > { %1073 = vmatpush3.bf16.msra.mxu0 (!%p963_p1), %v1543_v6  ;;  %1082 = vmatpush3.bf16.msra.mxu1 (!%p963_p1), %v1543_v6  ;;  %v1558_v14 = vpack.c.bf16 (!%p963_p1), %v341_v13, %v340_v12  ;;  %vm350_vm2 = vcmask (!%p963_p1), 130048   ;;  %vm358_vm3 = vcmask (!%p963_p1), 392192   ;;  %v1347_v18 = vmov (!%p963_p1), 0   ;;  %v1582_v19 = vld [vmem:[%s1675_s4] ss:$0 sm:$0xff] (!%p963_p1)  ;;  %s1348_s17 = smov (!%p963_p1), 64  }
  0x6b   : > { %1074 = vmatprep.subr.bf16.mxu0 (!%p963_p1), %v1343_v5  ;;  %440 = vrot.lane.b32.xlu1 (!%p963_p1), %v344_v10, %s1346_s11  ;;  %v1588_v23 = vld [vmem:[%s1672_s1] sm:$0xf] (!%p963_p1)  ;;  %s1349_s19 = smov (!%p963_p1), 96   ;;  %s1350_s15 = smov (!%p963_p1), 48   ;;  %vm818_vm12 = vcmask (!%p963_p1), 257024  }
  0x6c   : > { %1083 = vmatprep.subr.bf16.mxu1 (!%p963_p1), %v1343_v5  ;;  %1038 = vmatprep.mubr.msk.f32.mxu1 (!%p963_p1), %vm1344_vm1, %v1345_v9  ;;  %vm461_vm4 = vcmp.lt.s32.totalorder (!%p963_p1), %v460_v24, %v1588_v23  ;;  %v967_v43 = vld [vmem:[%s1524_s13 + $0x4] sm:$0xf] (!%p963_p1)  ;;  %s472_s21 = sadd.s32 (!%p963_p1), 1, %s1535_s12  ;;  %v970_v3 = vld [vmem:[%s1524_s13 + $0x8] sm:$0xf] (!%p963_p1)  ;;  %s586_s22 = sadd.s32 (!%p963_p1), 2, %s1535_s12 }
  0x6d   : > { %1187 = vset.pattern.permute.xlu0 (!%p963_p1), %v1347_v18  ;;  %1188 = vset.pattern.permute.xlu1 (!%p963_p1), %v1347_v18  ;;  %v462_v26 = vsel (!%p963_p1), %vm461_vm4, 1, %v1347_v18  ;;  %v577_v49 = vstv (!%p963_p1), %s472_s21  ;;  %s700_s26 = sadd.s32 (!%p963_p1), 3, %s1535_s12 }
  0x6e   : > { %1076 = vmatpush3.bf16.msra.mxu0 (!%p963_p1), %v1549_v11  ;;  %1085 = vmatpush3.bf16.msra.mxu1 (!%p963_p1), %v1549_v11  ;;  %vm578_vm6 = vcmp.lt.s32.totalorder (!%p963_p1), %v577_v49, %v1588_v23 }
  0x6f   : > { %1077 = vmatprep.subr.bf16.mxu0 %v1343_v5  ;;  %1086 = vmatprep.subr.bf16.mxu1 %v1343_v5  ;;  %v579_v51 = vsel %vm578_vm6, 1, %v1347_v18 }
  0x72   : > { %1079 = vmatpush3.bf16.msra.mxu0 %v1558_v14  ;;  %1088 = vmatpush3.bf16.msra.mxu1 %v1558_v14 }
  0x73   : > { %1089 = vmatprep.subr.bf16.mxu0 %v1343_v5  ;;  %1098 = vmatprep.subr.bf16.mxu1 %v1343_v5 }
  0xda   : > { %v348_v16 = vpop.permute.xlu0 %347 }
  0xdb   : > { %v351_v17 = vsel %vm350_vm2, %v345_v15, %v348_v16 }
  0xdc   : > { %1024 = vmatmul.mubr.msk.f32.vlgmr.msra.gmra.mrb[0].mxu0 %vm358_vm3, %v351_v17 }
  0xdd   : > { %1091 = vmatpush3.bf16.msra.mxu0 %v1543_v6  ;;  %1053 = vmatprep.mubr.msk.f32.mxu0 %vm1344_vm1, %v1345_v9  ;;  %v441_v33 = vpop.permute.xlu1 %440 }
  0xde   : > { %1092 = vmatprep.subr.bf16.mxu0 %v1343_v5 }
  0xe1   : > { %1094 = vmatpush3.bf16.msra.mxu0 %v1549_v11 }
  0xe2   : > { %1095 = vmatprep.subr.bf16.mxu0 %v1343_v5 }
  0xe5   : > { %1097 = vmatpush3.bf16.msra.mxu0 %v1558_v14 }
 0x1af   : > { %v428_v20 = vpop.f32.mrb[0].mxu0 }
 0x1b0   : > { %v429_v21 = vadd.f32 %v1582_v19, %v428_v20  ;;  %v1025_v22 = vpop.f32.mrb[1].mxu0 }
 0x1b2   : > { %1189 = vtanh.f32 %v429_v21  ;;  %v966_v27 = vmul.f32 -1.442695, %v429_v21 }
 0x1b4   : > { %1191 = vpow2.f32 %v966_v27 }
 0x1bc   : > { %v1190_v25 = vpop.eup %1189 }
 0x1bd   : > { %445 = vrot.lane.b32.xlu0 %v1190_v25, %s1348_s17 }
 0x1be   : > { %v1192_v28 = vpop.eup %1191 }
 0x1bf   : > { %v435_v29 = vadd.f32 1.0, %v1192_v28 }
 0x1c1   : > { %464 = vperm.xlu0 %1187, %v462_v26   ;;  %1193 = vrcp.f32 %v435_v29 }
 0x1cb   : > { %v1194_v30 = vpop.eup %1193 }
 0x1cc   : > { %v443_v34 = vmul.f32 %v1194_v30, %v441_v33 }
 0x22f   : > { %v446_v31 = vpop.permute.xlu0 %445 }
 0x230   : > { %v448_v32 = vmul.f32 %v1194_v30, %v446_v31 }
 0x232   : > { %450 = vrot.lane.b32.xlu1 %v448_v32, %s1346_s11 }
 0x240   : > { %v465_v39 = vpop.permute.xlu0 %464 }
 0x241   : > { %vm466_vm5 = vcmp.eq.s32.totalorder %v465_v39, 1 }
 0x2a4   : > { %v451_v35 = vpop.permute.xlu1 %450 }
 0x2a5   : > { %v453_v36 = vadd.f32 %v451_v35, %v443_v34 }
 0x2a7   : > { %1195 = vtanh.f32 %v453_v36  ;;  %v471_v58 = vsel %vm466_vm5, %v453_v36, %v441_v33  ;;  %v805_v36 = vstv %s700_s26 }
 0x2a8   : > { %vm806_vm10 = vcmp.lt.s32.totalorder %v805_v36, %v1588_v23 }
 0x2b1   : > { %v1196_v37 = vpop.eup %1195 }
 0x2b2   : > { %456 = vrot.lane.b32.xlu1 %v1196_v37, %s1348_s17 }
 0x2b6   : > { %467 = vrot.lane.b32.xlu1 %v1539_v2, %s1349_s19 }
 0x324   : > { %v457_v38 = vpop.permute.xlu1 %456 }
 0x325   : > { %v459_v40 = vmul.f32 %v1194_v30, %v457_v38  ;;  %v973_v30 = vld [vmem:[%s1524_s13 + $0xc] sm:$0xf]  ;;  %v807_v38 = vsel %vm806_vm10, 1, %v1347_v18 }
 0x328   : > { %v468_v41 = vpop.permute.xlu1 %467 }
 0x329   : > { %v470_v42 = vsel %vm466_vm5, %v459_v40, %v468_v41 }
 0x32a   : > { %476 = vrot.lane.b32.xlu0 %v470_v42, %s1350_s15 }
 0x39c   : > { %v477_v44 = vpop.permute.xlu0 %476 }
 0x39d   : > { %v479_v45 = vsel %vm350_vm2, %v967_v43, %v477_v44 }
 0x39e   : > { %1039 = vmatmul.mubr.msk.f32.vlgmr.msra.gmra.mrb[0].mxu1 %vm358_vm3, %v479_v45 }
 0x39f   : > { %1100 = vmatpush3.bf16.msra.mxu1 %v1543_v6  ;;  %1068 = vmatprep.mubr.msk.f32.mxu1 %vm1344_vm1, %v1345_v9  ;;  %v691_v9 = vstv %s586_s22 }
 0x3a0   : > { %1101 = vmatprep.subr.bf16.mxu1 %v1343_v5  ;;  %vm692_vm8 = vcmp.lt.s32.totalorder %v691_v9, %v1588_v23 }
 0x3a3   : > { %1103 = vmatpush3.bf16.msra.mxu1 %v1549_v11  ;;  %v693_v11 = vsel %vm692_vm8, 1, %v1347_v18 }
 0x3a4   : > { %1104 = vmatprep.subr.bf16.mxu1 %v1343_v5 }
 0x3a7   : > { %1106 = vmatpush3.bf16.msra.mxu1 %v1558_v14 }
 0x471   : > { %v549_v46 = vpop.f32.mrb[0].mxu1 }
 0x472   : > { %v550_v47 = vadd.f32 %v1582_v19, %v549_v46  ;;  %v1040_v48 = vpop.f32.mrb[1].mxu1 }
 0x474   : > { %1197 = vtanh.f32 %v550_v47  ;;  %v969_v52 = vmul.f32 -1.442695, %v550_v47 }
 0x476   : > { %1199 = vpow2.f32 %v969_v52 }
 0x47e   : > { %v1198_v50 = vpop.eup %1197 }
 0x47f   : > { %562 = vrot.lane.b32.xlu1 %v1198_v50, %s1348_s17 }
 0x480   : > { %v1200_v53 = vpop.eup %1199 }
 0x481   : > { %v556_v54 = vadd.f32 1.0, %v1200_v53 }
 0x483   : > { %581 = vperm.xlu1 %1188, %v579_v51   ;;  %1201 = vrcp.f32 %v556_v54 }
 0x48d   : > { %v1202_v55 = vpop.eup %1201 }
 0x48e   : > { %v560_v59 = vmul.f32 %v1202_v55, %v471_v58 }
 0x4f1   : > { %v563_v56 = vpop.permute.xlu1 %562 }
 0x4f2   : > { %v565_v57 = vmul.f32 %v1202_v55, %v563_v56 }
 0x4f4   : > { %567 = vrot.lane.b32.xlu0 %v565_v57, %s1346_s11 }
 0x502   : > { %v582_v63 = vpop.permute.xlu1 %581 }
 0x503   : > { %vm583_vm7 = vcmp.eq.s32.totalorder %v582_v63, 1 }
 0x566   : > { %v568_v60 = vpop.permute.xlu0 %567 }
 0x567   : > { %v570_v61 = vadd.f32 %v568_v60, %v560_v59 }
 0x569   : > { %1203 = vtanh.f32 %v570_v61  ;;  %v585_v20 = vsel %vm583_vm7, %v570_v61, %v471_v58 }
 0x573   : > { %v1204_v62 = vpop.eup %1203 }
 0x574   : > { %573 = vrot.lane.b32.xlu0 %v1204_v62, %s1348_s17 }
 0x5e6   : > { %v574_v0 = vpop.permute.xlu0 %573 }
 0x5e7   : > { %v576_v1 = vmul.f32 %v1202_v55, %v574_v0 }
 0x5e9   : > { %v584_v2 = vsel %vm583_vm7, %v576_v1, %v470_v42 }
 0x5ea   : > { %590 = vrot.lane.b32.xlu1 %v584_v2, %s1350_s15 }
 0x65c   : > { %v591_v4 = vpop.permute.xlu1 %590 }
 0x65d   : > { %v593_v5 = vsel %vm350_vm2, %v970_v3, %v591_v4 }
 0x65e   : > { %1054 = vmatmul.mubr.msk.f32.vlgmr.msra.gmra.mrb[2].mxu0 %vm358_vm3, %v593_v5 }
 0x731   : > { %v663_v6 = vpop.f32.mrb[2].mxu0 }
 0x732   : > { %v664_v7 = vadd.f32 %v1582_v19, %v663_v6  ;;  %v1055_v8 = vpop.f32.mrb[3].mxu0 }
 0x734   : > { %1205 = vtanh.f32 %v664_v7  ;;  %v972_v12 = vmul.f32 -1.442695, %v664_v7 }
 0x736   : > { %1207 = vpow2.f32 %v972_v12 }
 0x73e   : > { %v1206_v10 = vpop.eup %1205 }
 0x73f   : > { %676 = vrot.lane.b32.xlu0 %v1206_v10, %s1348_s17 }
 0x740   : > { %v1208_v13 = vpop.eup %1207 }
 0x741   : > { %v670_v14 = vadd.f32 1.0, %v1208_v13 }
 0x743   : > { %695 = vperm.xlu0 %1187, %v693_v11   ;;  %1209 = vrcp.f32 %v670_v14 }
 0x74d   : > { %v1210_v15 = vpop.eup %1209 }
 0x74e   : > { %v674_v21 = vmul.f32 %v1210_v15, %v585_v20 }
 0x7b1   : > { %v677_v16 = vpop.permute.xlu0 %676 }
 0x7b2   : > { %v679_v17 = vmul.f32 %v1210_v15, %v677_v16 }
 0x7b4   : > { %681 = vrot.lane.b32.xlu1 %v679_v17, %s1346_s11 }
 0x7c2   : > { %v696_v26 = vpop.permute.xlu0 %695 }
 0x7c3   : > { %vm697_vm9 = vcmp.eq.s32.totalorder %v696_v26, 1 }
 0x826   : > { %v682_v22 = vpop.permute.xlu1 %681 }
 0x827   : > { %v684_v24 = vadd.f32 %v682_v22, %v674_v21 }
 0x829   : > { %1211 = vtanh.f32 %v684_v24  ;;  %v699_v44 = vsel %vm697_vm9, %v684_v24, %v585_v20 }
 0x833   : > { %v1212_v25 = vpop.eup %1211 }
 0x834   : > { %687 = vrot.lane.b32.xlu1 %v1212_v25, %s1348_s17 }
 0x8a6   : > { %v688_v27 = vpop.permute.xlu1 %687 }
 0x8a7   : > { %v690_v28 = vmul.f32 %v1210_v15, %v688_v27 }
 0x8a9   : > { %v698_v29 = vsel %vm697_vm9, %v690_v28, %v584_v2 }
 0x8aa   : > { %704 = vrot.lane.b32.xlu0 %v698_v29, %s1350_s15 }
 0x91c   : > { %v705_v31 = vpop.permute.xlu0 %704 }
 0x91d   : > { %v707_v32 = vsel %vm350_vm2, %v973_v30, %v705_v31 }
 0x91e   : > { %1069 = vmatmul.mubr.msk.f32.vlgmr.msra.gmra.mrb[2].mxu1 %vm358_vm3, %v707_v32 }
 0x9f1   : > { %v777_v33 = vpop.f32.mrb[2].mxu1 }
 0x9f2   : > { %v778_v34 = vadd.f32 %v1582_v19, %v777_v33  ;;  %v1070_v35 = vpop.f32.mrb[3].mxu1 }
 0x9f4   : > { %1213 = vtanh.f32 %v778_v34  ;;  %v975_v39 = vmul.f32 -1.442695, %v778_v34 }
 0x9f6   : > { %1215 = vpow2.f32 %v975_v39 }
 0x9fe   : > { %v1214_v37 = vpop.eup %1213 }
 0x9ff   : > { %790 = vrot.lane.b32.xlu1 %v1214_v37, %s1348_s17 }
 0xa00   : > { %v1216_v40 = vpop.eup %1215 }
 0xa01   : > { %v784_v41 = vadd.f32 1.0, %v1216_v40 }
 0xa03   : > { %809 = vperm.xlu1 %1188, %v807_v38   ;;  %1217 = vrcp.f32 %v784_v41 }
 0xa0d   : > { %v1218_v42 = vpop.eup %1217 }
 0xa0e   : > { %v788_v45 = vmul.f32 %v1218_v42, %v699_v44 }
 0xa71   : > { %v791_v43 = vpop.permute.xlu1 %790 }
 0xa72   : > { %v793_v19 = vmul.f32 %v1218_v42, %v791_v43 }
 0xa74   : > { %795 = vrot.lane.b32.xlu0 %v793_v19, %s1346_s11 }
 0xa82   : > { %v810_v48 = vpop.permute.xlu1 %809 }
 0xa83   : > { %vm811_vm11 = vcmp.eq.s32.totalorder %v810_v48, 1 }
 0xae6   : > { %v796_v23 = vpop.permute.xlu0 %795 }
 0xae7   : > { %v798_v46 = vadd.f32 %v796_v23, %v788_v45 }
 0xae9   : > { %1219 = vtanh.f32 %v798_v46  ;;  %v813_v18 = vsel %vm811_vm11, %v798_v46, %v699_v44 }
 0xaf3   : > { %v1220_v47 = vpop.eup %1219 }
 0xaf4   : > { %801 = vrot.lane.b32.xlu0 %v1220_v47, %s1348_s17 }
 0xaf8   : > { %821 = vrot.lane.b32.xlu0 %v813_v18, %s1349_s19 }
 0xb66   : > { %v802_v49 = vpop.permute.xlu0 %801 }
 0xb67   : > { %v804_v50 = vmul.f32 %v1218_v42, %v802_v49 }
 0xb69   : > { %v812_v51 = vsel %vm811_vm11, %v804_v50, %v698_v29 }
 0xb6a   : > { %815 = vrot.lane.b32.xlu1 %v812_v51, %s1346_s11  ;;  %v822_v52 = vpop.permute.xlu0 %821 }
 0xb6b   : > { %824 = vst.msk [vmem:[#allocation3] sm:$0xf] %vm818_vm12, %v822_v52 }
 0xbdc   : > { %v816_v53 = vpop.permute.xlu1 %815 }
 0xbdd   : > { %819 = vst.msk [vmem:[#allocation2] sm:$0xf] %vm818_vm12, %v816_v53 }
 0xbde PF: > { %p976_p4 = scmp.ne.s32.totalorder %s1325_s8, 1 }
 0xbdf   : > { %v977_v55 = vld [vmem:[%s1676_s5] ss:$0 sm:$0xff] (!%p976_p4)  ;;  %vm839_vm13 = vcmask (!%p976_p4), 257024   ;;  %v978_v59 = vld [vmem:[#allocation6] ss:$0 sm:$0xff] (!%p976_p4)  ;;  %vm851_vm14 = vcmask (!%p976_p4), 3072  }
 0xbe0   : > { %828 = sbr.rel (%p976_p4) target bundleno = 3195 (0xc7b), region = 64 }
 0xbe4   : > { %v829_v54 = vld [vmem:[#allocation2] sm:$0xf] (!%p976_p4) }
 0xbe5   : > { %v830_v56 = vmax.f32 (!%p976_p4), %v829_v54, 0.0 }
 0xbe7   : > { %v838_v57 = vmul.f32 %v977_v55, %v830_v56 }
 0xbe9   : > { %v840_v58 = vsel %vm839_vm13, %v838_v57, 0.0 }
 0xbea   : > { %841 = vadd.xlane.f32.xlu0 %v840_v58 }
 0xc77   : > { %v842_v60 = vpop.xlane.xlu0 %841 }
 0xc78   : > { %v850_v61 = vadd.f32 %v978_v59, %v842_v60 }
 0xc7a   : > { %852 = vst.msk [vmem:[%s1678_s7] sm:$0xf] %vm851_vm14, %v850_v61 }
 0xc7b PF: > { %s24_s10 = sadd.s32 1, %s1333_s10   ;;  %s1691_s28 = smov %s1317_s29 }
 0xc7c   : > { %p21_p5 = scmp.ge.s32.totalorder %s24_s10, 4   ;;  %s1692_s29 = smov %s1321_s30 }
 0xc7d   : > { %s1693_s30 = smov %s1480_s20  ;;  %s1694_s8 = smov %s1329_s9 }
 0xc7e   : > { %s1695_s9 = smov %s1697_s16  ;;  %23 = sbr.rel (!%p21_p5) target bundleno = 8 (0x8), region = 106 }
 0xc85   :  { %872 = vsyncpa [#allocation8], 1 }
 0xc86   :  { %874 = vsyncpa [#allocation8 + $0x1], 1 }
 0xc87   :  { %875 = vsyncpa [#allocation10], 1 }

</bundles_post_ra>
